<compile_context>
chip_gen: v5e
topology: v5e:2x2
jax: 0.10.0
libtpu: 0.0.40
codegen_flags: <defaults>
</compile_context>

<pallas_src>
import functools

import jax
import jax.numpy as jnp
from jax.experimental import pallas as pl
from jax.experimental.pallas import tpu as pltpu

_LANE = 128
_SUBLANE = 8


def _round_up(x, m):
    return (x + m - 1) // m * m


def _mlp_kernel(x_ref, w1_ref, b1_ref, w2_ref, b2_ref, o_ref):
    # Layer 1: bf16 x bf16 -> f32 on the MXU.
    h = jnp.dot(x_ref[...], w1_ref[...], preferred_element_type=jnp.float32)
    h = h + b1_ref[...]
    # Sigmoid: exp on the EUP, approx reciprocal also on the EUP (keeps VALU free).
    h = pl.reciprocal(1.0 + jnp.exp(-h), approx=True)
    # Layer 2: cast activations back to bf16 for the MXU, f32 accumulate.
    o = jnp.dot(h.astype(w2_ref.dtype), w2_ref[...],
                preferred_element_type=jnp.float32)
    o_ref[...] = (o + b2_ref[...]).astype(o_ref.dtype)


@functools.partial(jax.jit, static_argnames=("block_m",))
def bp_forward(x, w1, b1, w2, b2, *, block_m=1024):
    """Forward pass of BPNeuralNetwork as a single Pallas TPU kernel.

    x : (B, input_size) f32
    w1: (input_size, hidden_size) f32     b1: (1, hidden_size) f32
    w2: (hidden_size, output_size) f32    b2: (1, output_size) f32
    returns logits (B, output_size) f32
    """
    B, K = x.shape
    Kw, H = w1.shape
    Hw, N = w2.shape
    assert K == Kw and H == Hw

    mxu_dtype = jnp.bfloat16

    # --- pad hidden / output widths to the 128-lane vreg width -------------
    Hp = _round_up(H, _LANE)
    Np = _round_up(N, _LANE)
    # Padded hidden columns become sigmoid(0)=0.5, but the matching w2 rows are
    # zero, so they contribute nothing to the logits. Padded output columns are
    # exactly zero and sliced off below.
    w1p = jnp.zeros((K, Hp), mxu_dtype).at[:, :H].set(w1.astype(mxu_dtype))
    b1p = jnp.zeros((1, Hp), jnp.float32).at[:, :H].set(b1.astype(jnp.float32))
    w2p = jnp.zeros((Hp, Np), mxu_dtype).at[:H, :N].set(w2.astype(mxu_dtype))
    b2p = jnp.zeros((1, Np), jnp.float32).at[:, :N].set(b2.astype(jnp.float32))

    # --- choose the batch tile and pad B to a multiple of it ----------------
    tm = min(block_m, _round_up(B, _SUBLANE))
    tm = _round_up(tm, _SUBLANE)
    Bp = _round_up(B, tm)
    xp = x.astype(mxu_dtype)          # bf16 x also halves the dominant HBM traffic
    if Bp != B:
        xp = jnp.pad(xp, ((0, Bp - B), (0, 0)))
    grid = (Bp // tm,)

    out = pl.pallas_call(
        _mlp_kernel,
        out_shape=jax.ShapeDtypeStruct((Bp, Np), jnp.float32),
        grid=grid,
        in_specs=[
            pl.BlockSpec((tm, K), lambda i: (i, 0)),   # batch-tiled activations
            pl.BlockSpec((K, Hp), lambda i: (0, 0)),   # resident weights/biases
            pl.BlockSpec((1, Hp), lambda i: (0, 0)),
            pl.BlockSpec((Hp, Np), lambda i: (0, 0)),
            pl.BlockSpec((1, Np), lambda i: (0, 0)),
        ],
        out_specs=pl.BlockSpec((tm, Np), lambda i: (i, 0)),
        compiler_params=pltpu.CompilerParams(
            dimension_semantics=("parallel",),
            vmem_limit_bytes=32 * 1024 * 1024,
        ),
    )(xp, w1p, b1p, w2p, b2p)

    # Slice off batch padding and the lane-padded output columns.
    return out[:B, :N]


def predict(x, w1, b1, w2, b2):
    # Mirrors BPNeuralNetwork.predict: softmax(dim=1) over the kernel logits.
    logits = bp_forward(x, w1, b1, w2, b2)
    return jax.nn.softmax(logits, axis=1)


def init_params(key, input_size, hidden_size, output_size):
    """Deterministic init mimicking torch nn.Linear default (U[-1/sqrt(fan_in), +])."""
    k1, k2, k3, k4 = jax.random.split(key, 4)
    bound1 = 1.0 / jnp.sqrt(input_size)
    bound2 = 1.0 / jnp.sqrt(hidden_size)
    w1 = jax.random.uniform(k1, (input_size, hidden_size), jnp.float32, -bound1, bound1)
    b1 = jax.random.uniform(k2, (1, hidden_size), jnp.float32, -bound1, bound1)
    w2 = jax.random.uniform(k3, (hidden_size, output_size), jnp.float32, -bound2, bound2)
    b2 = jax.random.uniform(k4, (1, output_size), jnp.float32, -bound2, bound2)
    return w1, b1, w2, b2


def _ref_forward(x, w1, b1, w2, b2):
    # Plain-JAX reference mirroring the kernel's bf16 matmul inputs / f32 accum.
    bf = jnp.bfloat16
    h = jnp.dot(x.astype(bf), w1.astype(bf), preferred_element_type=jnp.float32) + b1
    h = jax.nn.sigmoid(h)
    return jnp.dot(h.astype(bf), w2.astype(bf), preferred_element_type=jnp.float32) + b2


if __name__ == "__main__":
    key = jax.random.PRNGKey(0)
    kx, kp, kx2 = jax.random.split(key, 3)

    # Small shapes consistent with a generic MLP classifier.
    batch, input_size, hidden_size, output_size = 8, 16, 32, 4

    x = jax.random.normal(kx, (batch, input_size), jnp.float32)
    w1, b1, w2, b2 = init_params(kp, input_size, hidden_size, output_size)

    logits = bp_forward(x, w1, b1, w2, b2)
    jax.block_until_ready(logits)
    assert logits.shape == (batch, output_size)

    # Tolerance accounts for bf16 MXU inputs + approx reciprocal in the sigmoid.
    logits_ref = _ref_forward(x, w1, b1, w2, b2)
    assert jnp.allclose(logits, logits_ref, atol=2e-2, rtol=2e-2)

    # Exercise the multi-tile grid + tail padding path (B=100 not divisible by 32).
    x2 = jax.random.normal(kx2, (100, input_size), jnp.float32)
    logits2 = bp_forward(x2, w1, b1, w2, b2, block_m=32)
    jax.block_until_ready(logits2)
    assert logits2.shape == (100, output_size)
    assert jnp.allclose(logits2, _ref_forward(x2, w1, b1, w2, b2), atol=2e-2, rtol=2e-2)

    # predict(): softmax on top of kernel logits (lives outside forward(), as in torch).
    probs = predict(x, w1, b1, w2, b2)
    jax.block_until_ready(probs)
    assert jnp.allclose(jnp.sum(probs, axis=1), 1.0, atol=1e-5)

    print("KERNEL_OK")
</pallas_src>

<mosaic_0001>
module attributes {stable_mosaic.version = 11 : i64} {
  func.func @_mlp_kernel(%arg0: i32, %arg1: memref<8x16xbf16, #tpu.memory_space<vmem>>, %arg2: memref<16x128xbf16, #tpu.memory_space<vmem>>, %arg3: memref<1x128xf32, #tpu.memory_space<vmem>>, %arg4: memref<128x128xbf16, #tpu.memory_space<vmem>>, %arg5: memref<1x128xf32, #tpu.memory_space<vmem>>, %arg6: memref<8x128xf32, #tpu.memory_space<vmem>>) attributes {dimension_semantics = [#tpu.dimension_semantics<parallel>], iteration_bounds = array<i64: 1>, scalar_prefetch = 0 : i64, scratch_operands = 0 : i64, tpu.core_type = #tpu.core_type<tc>, window_params = [{transform_indices = @transform_0, window_bounds = array<i64: 8, 16>}, {pipeline_mode = #tpu.pipeline_mode<synchronous>, transform_indices = @transform_1, window_bounds = array<i64: 16, 128>}, {pipeline_mode = #tpu.pipeline_mode<synchronous>, transform_indices = @transform_2, window_bounds = array<i64: 1, 128>}, {pipeline_mode = #tpu.pipeline_mode<synchronous>, transform_indices = @transform_3, window_bounds = array<i64: 128, 128>}, {pipeline_mode = #tpu.pipeline_mode<synchronous>, transform_indices = @transform_4, window_bounds = array<i64: 1, 128>}, {transform_indices = @transform_5, window_bounds = array<i64: 8, 128>}]} {
    %c0 = arith.constant 0 : index
    %c0_0 = arith.constant 0 : index
    %0 = vector.load %arg1[%c0, %c0_0] : memref<8x16xbf16, #tpu.memory_space<vmem>>, vector<8x16xbf16>
    %c0_1 = arith.constant 0 : index
    %c0_2 = arith.constant 0 : index
    %1 = vector.load %arg2[%c0_1, %c0_2] : memref<16x128xbf16, #tpu.memory_space<vmem>>, vector<16x128xbf16>
    %cst = arith.constant dense<0.000000e+00> : vector<8x128xf32>
    %2 = tpu.matmul %0, %1, %cst {dimension_numbers = #tpu.dot_dimension_numbers<[1], [0], [0], [1], [0, 0, 1, 1], [], []>} : vector<8x16xbf16>, vector<16x128xbf16>, vector<8x128xf32> -> vector<8x128xf32>
    %c0_3 = arith.constant 0 : index
    %c0_4 = arith.constant 0 : index
    %3 = vector.load %arg3[%c0_3, %c0_4] : memref<1x128xf32, #tpu.memory_space<vmem>>, vector<1x128xf32>
    %4 = vector.broadcast %3 : vector<1x128xf32> to vector<8x128xf32>
    %5 = arith.addf %2, %4 : vector<8x128xf32>
    %cst_5 = arith.constant 0.000000e+00 : f32
    %6 = vector.broadcast %cst_5 : f32 to vector<8x128xf32>
    %7 = arith.subf %6, %5 : vector<8x128xf32>
    %8 = math.exp %7 : vector<8x128xf32>
    %cst_6 = arith.constant 1.000000e+00 : f32
    %9 = vector.broadcast %cst_6 : f32 to vector<8x128xf32>
    %10 = arith.addf %9, %8 : vector<8x128xf32>
    %11 = tpu.reciprocal %10 {approx = true} : vector<8x128xf32> -> vector<8x128xf32>
    %12 = arith.truncf %11 : vector<8x128xf32> to vector<8x128xbf16>
    %c0_7 = arith.constant 0 : index
    %c0_8 = arith.constant 0 : index
    %13 = vector.load %arg4[%c0_7, %c0_8] : memref<128x128xbf16, #tpu.memory_space<vmem>>, vector<128x128xbf16>
    %cst_9 = arith.constant dense<0.000000e+00> : vector<8x128xf32>
    %14 = tpu.matmul %12, %13, %cst_9 {dimension_numbers = #tpu.dot_dimension_numbers<[1], [0], [0], [1], [0, 0, 1, 1], [], []>} : vector<8x128xbf16>, vector<128x128xbf16>, vector<8x128xf32> -> vector<8x128xf32>
    %c0_10 = arith.constant 0 : index
    %c0_11 = arith.constant 0 : index
    %15 = vector.load %arg5[%c0_10, %c0_11] : memref<1x128xf32, #tpu.memory_space<vmem>>, vector<1x128xf32>
    %16 = vector.broadcast %15 : vector<1x128xf32> to vector<8x128xf32>
    %17 = arith.addf %14, %16 : vector<8x128xf32>
    %c0_12 = arith.constant 0 : index
    %c0_13 = arith.constant 0 : index
    %18 = vector.load %arg6[%c0_12, %c0_13] : memref<8x128xf32, #tpu.memory_space<vmem>>, vector<8x128xf32>
    tpu.vector_store %arg6[%c0_12, %c0_13], %17 {strides = array<i32>} : memref<8x128xf32, #tpu.memory_space<vmem>>, vector<8x128xf32>,
    return
  }
  func.func @transform_0(%arg0: i32) -> (i32, i32) {
    %c0_i32 = arith.constant 0 : i32
    %c0_i32_0 = arith.constant 0 : i32
    return %arg0, %c0_i32 : i32, i32
  }
  func.func @transform_1(%arg0: i32) -> (i32, i32) {
    %c0_i32 = arith.constant 0 : i32
    %c0_i32_0 = arith.constant 0 : i32
    %c0_i32_1 = arith.constant 0 : i32
    return %c0_i32, %c0_i32_0 : i32, i32
  }
  func.func @transform_2(%arg0: i32) -> (i32, i32) {
    %c0_i32 = arith.constant 0 : i32
    %c0_i32_0 = arith.constant 0 : i32
    %c0_i32_1 = arith.constant 0 : i32
    return %c0_i32, %c0_i32_0 : i32, i32
  }
  func.func @transform_3(%arg0: i32) -> (i32, i32) {
    %c0_i32 = arith.constant 0 : i32
    %c0_i32_0 = arith.constant 0 : i32
    %c0_i32_1 = arith.constant 0 : i32
    return %c0_i32, %c0_i32_0 : i32, i32
  }
  func.func @transform_4(%arg0: i32) -> (i32, i32) {
    %c0_i32 = arith.constant 0 : i32
    %c0_i32_0 = arith.constant 0 : i32
    %c0_i32_1 = arith.constant 0 : i32
    return %c0_i32, %c0_i32_0 : i32, i32
  }
  func.func @transform_5(%arg0: i32) -> (i32, i32) {
    %c0_i32 = arith.constant 0 : i32
    %c0_i32_0 = arith.constant 0 : i32
    return %arg0, %c0_i32 : i32, i32
  }
}

</mosaic_0001>

<bundles_post_ra>
// kernel: bp_forward.1
= control target key start
LH: loop header
LB: loop body
LE: loop exit
PB: predicated region body
PF: predicated region fallthrough
CT: control target
= control target key end

     0   :  { %vm34_vm0 = vcmask 130048   ;;  %s264_s1 = inlined_call_operand.vmem [shape: bf16[16,128], index: 1, kind: input, shape index: {}]   ;;  %s265_s0 = inlined_call_operand.vmem [shape: bf16[8,16], index: 0, kind: input, shape index: {}]   ;;  %s266_s3 = inlined_call_operand.vmem [shape: bf16[128,128], index: 3, kind: input, shape index: {}]   ;;  %s267_s2 = inlined_call_operand.vmem [shape: f32[1,128], index: 2, kind: input, shape index: {}]   ;;  %s268_s4 = inlined_call_operand.vmem [shape: f32[1,128], index: 4, kind: input, shape index: {}]   ;;  %s269_s5 = inlined_call_operand.vmem [shape: f32[8,128], index: 5, kind: output, shape index: {}]  }
   0x1   :  { %v180_v0 = vld [vmem:[%s264_s1] sm:$0xff]  ;;  %v188_v1 = vld [vmem:[%s266_s3 + $0x38] sm:$0xff]  ;;  %v187_v3 = vld [vmem:[%s266_s3 + $0x30] sm:$0xff] }
   0x2   :  { %45 = vmatpush.bf16.msra.mxu0 %v180_v0  ;;  %v21_v2 = vld [vmem:[%s265_s0] sm:$0xf]  ;;  %125 = vmatpush.bf16.msra.mxu1 %v188_v1  ;;  %v186_v4 = vld [vmem:[%s266_s3 + $0x28] sm:$0xff]  ;;  %v184_v6 = vld [vmem:[%s266_s3 + $0x18] sm:$0xff] }
   0x3   :  { %v185_v5 = vld [vmem:[%s266_s3 + $0x20] sm:$0xff]  ;;  %v183_v7 = vld [vmem:[%s266_s3 + $0x10] sm:$0xff]  ;;  %v182_v8 = vld [vmem:[%s266_s3 + $0x8] sm:$0xff] }
   0x4   :  { %v181_v9 = vld [vmem:[%s266_s3] sm:$0xff] }
   0x5   :  { %147 = vmatmul.msk.bf16.vlgmr.msra.gmra.mxu0 %vm34_vm0, %v21_v2  ;;  %v189_v10 = vld [vmem:[%s267_s2] ss:$0 sm:$0xff] }
   0x6   :  { %126 = vmatpush.bf16.msra.mxu1 %v187_v3  ;;  %v190_v20 = vld [vmem:[%s268_s4] ss:$0 sm:$0xff] }
   0xa   :  { %127 = vmatpush.bf16.msra.mxu1 %v186_v4 }
   0xe   :  { %128 = vmatpush.bf16.msra.mxu1 %v185_v5 }
  0x12   :  { %129 = vmatpush.bf16.msra.mxu1 %v184_v6 }
  0x16   :  { %130 = vmatpush.bf16.msra.mxu1 %v183_v7 }
  0x1a   :  { %131 = vmatpush.bf16.msra.mxu1 %v182_v8 }
  0x1e   :  { %132 = vmatpush.bf16.msra.mxu1 %v181_v9 }
  0x82   :  { %v47_v11 = vpop.f32.mrf.mxu0 }
  0x83   :  { %v48_v12 = vadd.f32 %v189_v10, %v47_v11 }
  0x85   :  { %v51_v13 = vsub.f32 0.0, %v48_v12 }
  0x87   :  { %v52_v14 = vmul.f32 1.442695, %v51_v13 }
  0x89   :  { %191 = vpow2.f32 %v52_v14 }
  0x8a   :  { %v49_v15 = vpop.f32.mrf.mxu0 }
  0x8f   :  { %v192_v16 = vpop.eup %191 }
  0x90   :  { %v54_v17 = vadd.f32 1.0, %v192_v16 }
  0x92   :  { %193 = vrcp.f32 %v54_v17 }
  0x98   :  { %v194_v18 = vpop.eup %193 }
  0x99   :  { %v56_v19 = vpack.c.bf16 %v194_v18, %v194_v18 }
  0x9b   :  { %133 = vmatmul.bf16.vlgmr.msra.gmra.mxu1 %v56_v19 }
 0x118   :  { %v134_v21 = vpop.f32.mrf.mxu1 }
 0x119   :  { %v135_v22 = vadd.f32 %v190_v20, %v134_v21 }
 0x11b   :  { %138 = vst [vmem:[%s269_s5] sm:$0xff] %v135_v22 }
 0x120   :  { %v136_v23 = vpop.f32.mrf.mxu1 }

</bundles_post_ra>
